<compile_context>
chip_gen: v6e
topology: v6e:2x2x1
jax: 0.10.0
libtpu: 0.0.40
codegen_flags: <defaults>
</compile_context>

<pallas_src>
import functools

import jax
import jax.numpy as jnp
from jax import lax
from jax.experimental import pallas as pl
from jax.experimental.pallas import tpu as pltpu

_EPS = 1e-5


def _round_up(x, m):
    return ((x + m - 1) // m) * m


def _largest_tile(n, cap):
    """Largest multiple of 8 dividing n (n is a multiple of 8) that is <= cap."""
    cap = int(max(8, min(cap, n)))
    best, d = 8, 8
    while d <= cap:
        if n % d == 0:
            best = d
        d += 8
    return best


def _vmem_budget():
    """Per-generation scoped-VMEM budget (bytes)."""
    try:
        cap = int(pltpu.get_tpu_info().vmem_capacity_bytes)
    except Exception:
        cap = 64 * 1024 * 1024          # conservative (v7x per-core VMEM)
    return max(32 * 1024 * 1024, min(int(cap * 0.75), 96 * 1024 * 1024))


# ---------------------------------------------------------------------------
# Pass 1: BatchNorm batch statistics.
# x2d is the zero-padded (T_pad*Bp, Fp) input; zero padding does not perturb
# the sums — we divide by the true element count n_true = T*B.
# ---------------------------------------------------------------------------
def _bn_stats_kernel(x_ref, mean_ref, var_ref, sum_sc, sq_sc, *, n_true):
    i = pl.program_id(0)

    @pl.when(i == 0)
    def _():
        sum_sc[...] = jnp.zeros_like(sum_sc)
        sq_sc[...] = jnp.zeros_like(sq_sc)

    x = x_ref[...]                                    # (rows, Fp)
    xr = x.reshape(-1, 8, x.shape[-1])                # tile-aligned view
    # Sublane-parallel partial sums: hot loop is pure load/VALU; the XLU
    # cross-sublane reduce happens exactly once, in the finalizer below.
    sum_sc[...] += jnp.sum(xr, axis=0)
    sq_sc[...] += jnp.sum(xr * xr, axis=0)

    @pl.when(i == pl.num_programs(0) - 1)
    def _():
        inv_n = 1.0 / float(n_true)
        mean = jnp.sum(sum_sc[...], axis=0, keepdims=True) * inv_n
        ex2 = jnp.sum(sq_sc[...], axis=0, keepdims=True) * inv_n
        mean_ref[...] = mean
        # E[x^2] - mean^2 can cancel slightly negative in f32 -> clamp.
        var_ref[...] = jnp.maximum(ex2 - mean * mean, 0.0)


# ---------------------------------------------------------------------------
# Pass 2: BN (folded on the fly) + input-to-hidden projection for both
# directions, bf16 GEMM with f32 accumulation, output stored in bf16.
# Grid is (row blocks, output-column blocks); the x block stays resident
# across the inner column axis.
# ---------------------------------------------------------------------------
def _bn_gemm_kernel(x_ref, mean_ref, var_ref, gamma_ref, beta_ref,
                    w_ref, bias_ref, gi_ref):
    inv = lax.rsqrt(var_ref[...] + _EPS)                  # (1, Fp)
    scale = gamma_ref[...] * inv
    shift = beta_ref[...] - mean_ref[...] * scale
    xbn = (x_ref[...] * scale + shift).astype(jnp.bfloat16)   # (RM, Fp)
    acc = jnp.dot(xbn, w_ref[...], preferred_element_type=jnp.float32)
    gi_ref[...] = (acc + bias_ref[...]).astype(gi_ref.dtype)  # (RM, TN) bf16


# ---------------------------------------------------------------------------
# Pass 3: bidirectional GRU recurrence, chunked over T (and over batch halves).
#   len_ref : per-sequence lengths for this batch block   (bb, 1)   int32
#   gif_ref : forward-direction gi chunk c                 (TC, bb, 3Hp) bf16
#   gib_ref : backward-direction gi chunk Nc-1-c           (TC, bb, 3Hp) bf16
#   whhf/whhb_hbm : recurrent weights, raw HBM refs        (Hp, 3Hp) bf16
#   bhn_ref : n-gate recurrent biases [fwd | bwd]          (1, 2Hp)  f32
#   whhf/whhb_vmem : single-buffered VMEM copies (scratch, DMA'd at c == 0)
#   h_ref   : persistent hidden state [h_f | h_b]          (bb, 2Hp) f32
# ---------------------------------------------------------------------------
def _gru_kernel(len_ref, gif_ref, gib_ref, whhf_hbm, whhb_hbm, bhn_ref,
                outf_ref, outb_ref,
                whhf_vmem, whhb_vmem, h_ref, dma_sem, *, tc, hp, unroll):
    c = pl.program_id(1)
    nc = pl.num_programs(1)

    # Recurrent weights: manual, single-buffered load (avoids the 2x
    # double-buffer allocation a constant BlockSpec would get — critical for
    # large H on v7x's 64 MiB VMEM).  Re-issued per batch block; cheap.
    @pl.when(c == 0)
    def _():
        h_ref[...] = jnp.zeros_like(h_ref)
        cpf = pltpu.make_async_copy(whhf_hbm, whhf_vmem, dma_sem.at[0])
        cpb = pltpu.make_async_copy(whhb_hbm, whhb_vmem, dma_sem.at[1])
        cpf.start()
        cpb.start()
        cpf.wait()
        cpb.wait()

    lengths = len_ref[...]                                # (bb, 1) int32
    bhn_f = bhn_ref[:, :hp]                               # (1, Hp)
    bhn_b = bhn_ref[:, hp:]
    base_f = c * tc
    base_b = (nc - 1 - c) * tc

    def step(tt, carry):
        hf, hb = carry                                    # (bb, Hp) f32 each
        ttb = tc - 1 - tt

        gi_f = gif_ref[tt]                                # (bb, 3Hp) bf16
        gi_b = gib_ref[ttb]                               # (bb, 3Hp) bf16

        # Two small per-direction matmuls (no block-diagonal zero MACs); the
        # independent fwd/bwd chains let the scheduler overlap one direction's
        # MXU push with the other's VPU/EUP gate math.
        gh_f = jnp.dot(hf.astype(jnp.bfloat16), whhf_vmem[...],
                       preferred_element_type=jnp.float32)    # (bb, 3Hp)
        gh_b = jnp.dot(hb.astype(jnp.bfloat16), whhb_vmem[...],
                       preferred_element_type=jnp.float32)

        # PyTorch gate order r, z, n; bih + bhh for r/z already folded into gi.
        # TODO(synk): if the bundle dump shows the EUP slot binding, switch the
        # r/z sigmoids to pl.reciprocal(1 + exp(-x), approx=True).
        r_f = jax.nn.sigmoid(gi_f[:, :hp] + gh_f[:, :hp])
        z_f = jax.nn.sigmoid(gi_f[:, hp:2 * hp] + gh_f[:, hp:2 * hp])
        n_f = jnp.tanh(gi_f[:, 2 * hp:] + r_f * (gh_f[:, 2 * hp:] + bhn_f))
        hf_new = (1.0 - z_f) * n_f + z_f * hf

        r_b = jax.nn.sigmoid(gi_b[:, :hp] + gh_b[:, :hp])
        z_b = jax.nn.sigmoid(gi_b[:, hp:2 * hp] + gh_b[:, hp:2 * hp])
        n_b = jnp.tanh(gi_b[:, 2 * hp:] + r_b * (gh_b[:, 2 * hp:] + bhn_b))
        hb_new = (1.0 - z_b) * n_b + z_b * hb

        mask_f = (base_f + tt) < lengths                  # (bb, 1) bool
        mask_b = (base_b + ttb) < lengths
        hf_upd = jnp.where(mask_f, hf_new, hf)
        hb_upd = jnp.where(mask_b, hb_new, hb)

        outf_ref[tt] = jnp.where(mask_f, hf_upd, 0.0).astype(outf_ref.dtype)
        outb_ref[ttb] = jnp.where(mask_b, hb_upd, 0.0).astype(outb_ref.dtype)
        return hf_upd, hb_upd

    hf0 = h_ref[:, :hp]
    hb0 = h_ref[:, hp:]
    hf_end, hb_end = lax.fori_loop(0, tc, step, (hf0, hb0), unroll=unroll)
    h_ref[:, :hp] = hf_end
    h_ref[:, hp:] = hb_end


# ---------------------------------------------------------------------------
# Wrapper
# ---------------------------------------------------------------------------
def rnn_block_forward(x, lengths, params):
    """x: (B, T, F) float32, lengths: (B,) int32 (max(lengths) == T)."""
    f32 = jnp.float32
    bf16 = jnp.bfloat16
    x = x.astype(f32)
    B, T, F = x.shape
    H = params["wih_f"].shape[0] // 3

    Bp = _round_up(B, 8)
    Fp = _round_up(F, 128)
    Hp = _round_up(H, 128)

    # Batch halves for the pass-3 "parallel" axis (v7x second TensorCore).
    # TODO(synk): on v7x, when Bp % 16 != 0 it can pay to pad Bp up to 16k so
    # both cores are used; kept padding-free here for v5e/v6e.
    if Bp >= 16 and Bp % 16 == 0:
        nb, bb = 2, Bp // 2
    else:
        nb, bb = 1, Bp

    # ---------------- parameter packing (static host prep) -----------------
    def gate_pad_cols(w_t, rows_pad):
        # w_t: (3H, in_dim) PyTorch layout -> (rows_pad, 3Hp), each gate's H
        # columns placed lane-aligned at g*Hp.
        in_dim = w_t.shape[1]
        out = jnp.zeros((rows_pad, 3 * Hp), f32)
        for g in range(3):
            blk = w_t[g * H:(g + 1) * H, :].T.astype(f32)
            out = out.at[:in_dim, g * Hp:g * Hp + H].set(blk)
        return out

    def gate_pad_vec(b):
        out = jnp.zeros((1, 3 * Hp), f32)
        for g in range(3):
            out = out.at[0, g * Hp:g * Hp + H].set(b[g * H:(g + 1) * H].astype(f32))
        return out

    wih_f_p = gate_pad_cols(params["wih_f"], Fp)          # (Fp, 3Hp)
    wih_b_p = gate_pad_cols(params["wih_b"], Fp)
    w_comb = jnp.concatenate([wih_f_p, wih_b_p], axis=1).astype(bf16)  # (Fp, 6Hp)

    def fold_bias(bih, bhh):
        # bih + bhh for r/z gates; n-gate recurrent bias kept separate.
        bi = gate_pad_vec(bih)
        bh = gate_pad_vec(bhh).at[0, 2 * Hp:].set(0.0)
        return bi + bh

    bias_comb = jnp.concatenate(
        [fold_bias(params["bih_f"], params["bhh_f"]),
         fold_bias(params["bih_b"], params["bhh_b"])], axis=1)      # (1, 6Hp)

    bhn = jnp.zeros((1, 2 * Hp), f32)
    bhn = bhn.at[0, :H].set(params["bhh_f"][2 * H:].astype(f32))
    bhn = bhn.at[0, Hp:Hp + H].set(params["bhh_b"][2 * H:].astype(f32))

    # Two separate per-direction recurrent weights (no block-diagonal zeros).
    whh_f_p = gate_pad_cols(params["whh_f"], Hp).astype(bf16)   # (Hp, 3Hp)
    whh_b_p = gate_pad_cols(params["whh_b"], Hp).astype(bf16)

    gamma = jnp.zeros((1, Fp), f32).at[0, :F].set(params["gamma"].astype(f32))
    beta = jnp.zeros((1, Fp), f32).at[0, :F].set(params["beta"].astype(f32))
    len2d = jnp.zeros((Bp, 1), jnp.int32).at[:B, 0].set(lengths.astype(jnp.int32))

    # ---------------- sizing from the per-generation VMEM budget -----------
    budget = _vmem_budget()
    sizing = int(budget * 0.85)

    # Pass 3: constants = single-buffered whh_f + whh_b + h scratch.
    const3 = 2 * (Hp * 3 * Hp * 2) + bb * 2 * Hp * 4 + (256 << 10)
    chunk_budget = max(sizing - const3, 1 << 20)
    # Per time step (double-buffered): 2 dirs x (gi bf16 in + out bf16).
    per_tc3 = 2 * 2 * bb * 3 * Hp * 2 + 2 * 2 * bb * Hp * 2
    tc = 8
    for cand in (512, 256, 128, 64, 32, 16, 8):       # v6e/v5e headroom -> 512
        if cand * per_tc3 <= chunk_budget:
            tc = cand
            break
    tc = min(tc, _round_up(T, 8))
    nc = (T + tc - 1) // tc
    tc = _round_up(-(-T // nc), 8)                    # shrink chunk to trim pad
    T_pad = nc * tc
    M = T_pad * Bp

    # Pass 2: tile the 6Hp output dim so the double-buffered weight tile fits.
    tn = Hp
    for cand in (6 * Hp, 3 * Hp, 2 * Hp, Hp):
        if 2 * Fp * cand * 2 <= sizing // 2:
            tn = cand
            break
    nj = (6 * Hp) // tn
    per_row2 = 2 * (Fp * 4 + tn * 2)                  # double-buffered x + gi
    rm_cap = max((sizing - 2 * Fp * tn * 2 - (1 << 20)) // per_row2, 8)
    rm = _largest_tile(M, min(rm_cap, 16384))

    # Pass 1: pure HBM-bound; pick the largest row tile that fits (>= 512 when
    # possible), independent of the GEMM tile.
    rows1 = _largest_tile(M, min(sizing // (2 * Fp * 4), 16384))

    # fori unroll: more ILP across the two chains at small Hp, avoid spills at
    # large Hp.
    if Hp <= 256:
        unroll = 4
    elif Hp <= 768:
        unroll = 2
    else:
        unroll = 1

    # ---------------- input padding (single fused pad, time-major) ---------
    x_pad = jnp.pad(jnp.transpose(x, (1, 0, 2)),
                    ((0, T_pad - T), (0, Bp - B), (0, Fp - F)))
    x2d = x_pad.reshape(M, Fp)

    vmem_limit = int(budget)
    cp1 = pltpu.CompilerParams(dimension_semantics=("arbitrary",),
                               vmem_limit_bytes=vmem_limit)
    cp2 = pltpu.CompilerParams(dimension_semantics=("parallel", "arbitrary"),
                               vmem_limit_bytes=vmem_limit)
    cp3 = pltpu.CompilerParams(dimension_semantics=("parallel", "arbitrary"),
                               vmem_limit_bytes=vmem_limit)

    # -------- pass 1: BN batch statistics -----------------------------------
    mean, var = pl.pallas_call(
        functools.partial(_bn_stats_kernel, n_true=T * B),
        grid=(M // rows1,),
        in_specs=[pl.BlockSpec((rows1, Fp), lambda i: (i, 0))],
        out_specs=(pl.BlockSpec((1, Fp), lambda i: (0, 0)),
                   pl.BlockSpec((1, Fp), lambda i: (0, 0))),
        out_shape=(jax.ShapeDtypeStruct((1, Fp), f32),
                   jax.ShapeDtypeStruct((1, Fp), f32)),
        scratch_shapes=[pltpu.VMEM((8, Fp), f32), pltpu.VMEM((8, Fp), f32)],
        compiler_params=cp1,
    )(x2d)

    # -------- pass 2: BN-folded input projection GEMM (both directions) -----
    gi2d = pl.pallas_call(
        _bn_gemm_kernel,
        grid=(M // rm, nj),
        in_specs=[pl.BlockSpec((rm, Fp), lambda i, j: (i, 0)),
                  pl.BlockSpec((1, Fp), lambda i, j: (0, 0)),
                  pl.BlockSpec((1, Fp), lambda i, j: (0, 0)),
                  pl.BlockSpec((1, Fp), lambda i, j: (0, 0)),
                  pl.BlockSpec((1, Fp), lambda i, j: (0, 0)),
                  pl.BlockSpec((Fp, tn), lambda i, j: (0, j)),
                  pl.BlockSpec((1, tn), lambda i, j: (0, j))],
        out_specs=pl.BlockSpec((rm, tn), lambda i, j: (i, j)),
        out_shape=jax.ShapeDtypeStruct((M, 6 * Hp), bf16),
        compiler_params=cp2,
    )(x2d, mean, var, gamma, beta, w_comb, bias_comb)
    gi3d = gi2d.reshape(T_pad, Bp, 6 * Hp)

    # -------- pass 3: bidirectional GRU recurrence ---------------------------
    out_f, out_b = pl.pallas_call(
        functools.partial(_gru_kernel, tc=tc, hp=Hp, unroll=unroll),
        grid=(nb, nc),
        in_specs=[pl.BlockSpec((bb, 1), lambda b, c: (b, 0)),
                  pl.BlockSpec((tc, bb, 3 * Hp), lambda b, c: (c, b, 0)),
                  pl.BlockSpec((tc, bb, 3 * Hp),
                               lambda b, c: (pl.num_programs(1) - 1 - c, b, 1)),
                  pl.BlockSpec(memory_space=pl.ANY),       # whh_f (HBM)
                  pl.BlockSpec(memory_space=pl.ANY),       # whh_b (HBM)
                  pl.BlockSpec((1, 2 * Hp), lambda b, c: (0, 0))],
        out_specs=(pl.BlockSpec((tc, bb, Hp), lambda b, c: (c, b, 0)),
                   pl.BlockSpec((tc, bb, Hp),
                                lambda b, c: (pl.num_programs(1) - 1 - c, b, 0))),
        out_shape=(jax.ShapeDtypeStruct((T_pad, Bp, Hp), bf16),
                   jax.ShapeDtypeStruct((T_pad, Bp, Hp), bf16)),
        scratch_shapes=[pltpu.VMEM((Hp, 3 * Hp), bf16),    # whh_f (single-buf)
                        pltpu.VMEM((Hp, 3 * Hp), bf16),    # whh_b (single-buf)
                        pltpu.VMEM((bb, 2 * Hp), f32),     # persistent h
                        pltpu.SemaphoreType.DMA((2,))],
        compiler_params=cp3,
    )(len2d, gi3d, gi3d, whh_f_p, whh_b_p, bhn)

    out = out_f.astype(f32) + out_b.astype(f32)            # sum of directions
    out = jnp.transpose(out, (1, 0, 2))[:B, :T, :H]        # (B, T, H)
    return out


if __name__ == "__main__":
    B, T, F, H = 2, 8, 32, 32
    key = jax.random.PRNGKey(0)
    keys = jax.random.split(key, 10)

    x = jax.random.normal(keys[0], (B, T, F), dtype=jnp.float32)
    # pack_padded_sequence expects lengths sorted descending; max length == T.
    lengths = jnp.array([T, 5], dtype=jnp.int32)

    k = 1.0 / (H ** 0.5)  # PyTorch GRU init: U(-1/sqrt(H), 1/sqrt(H))

    def u(kk, shape):
        return jax.random.uniform(kk, shape, jnp.float32, -k, k)

    params = {
        # BatchNorm1d(input_size) default init
        "gamma": jnp.ones((F,), jnp.float32),
        "beta": jnp.zeros((F,), jnp.float32),
        # forward-direction GRU params (weight_ih_l0, weight_hh_l0, biases)
        "wih_f": u(keys[1], (3 * H, F)),
        "whh_f": u(keys[2], (3 * H, H)),
        "bih_f": u(keys[3], (3 * H,)),
        "bhh_f": u(keys[4], (3 * H,)),
        # backward-direction GRU params (*_reverse)
        "wih_b": u(keys[5], (3 * H, F)),
        "whh_b": u(keys[6], (3 * H, H)),
        "bih_b": u(keys[7], (3 * H,)),
        "bhh_b": u(keys[8], (3 * H,)),
    }

    out = rnn_block_forward(x, lengths, params)
    out = jax.block_until_ready(out)
    assert out.shape == (B, T, H) and out.dtype == jnp.float32
    assert bool(jnp.all(jnp.isfinite(out)))
    print("KERNEL_OK")
</pallas_src>

<mosaic_0001>
module attributes {stable_mosaic.version = 11 : i64} {
  func.func @_bn_stats_kernel(%arg0: i32, %arg1: memref<64x128xf32, #tpu.memory_space<vmem>>, %arg2: memref<1x128xf32, #tpu.memory_space<vmem>>, %arg3: memref<1x128xf32, #tpu.memory_space<vmem>>, %arg4: memref<8x128xf32, #tpu.memory_space<vmem>>, %arg5: memref<8x128xf32, #tpu.memory_space<vmem>>) attributes {dimension_semantics = [#tpu.dimension_semantics<arbitrary>], iteration_bounds = array<i64: 1>, scalar_prefetch = 0 : i64, scratch_operands = 2 : i64, tpu.core_type = #tpu.core_type<tc>, window_params = [{transform_indices = @transform_0, window_bounds = array<i64: 64, 128>}, {pipeline_mode = #tpu.pipeline_mode<synchronous>, transform_indices = @transform_1, window_bounds = array<i64: 1, 128>}, {pipeline_mode = #tpu.pipeline_mode<synchronous>, transform_indices = @transform_2, window_bounds = array<i64: 1, 128>}]} {
    %c0_i32 = arith.constant 0 : i32
    %0 = arith.cmpi eq, %arg0, %c0_i32 : i32
    %1 = arith.extui %0 : i1 to i32
    %c0_i32_0 = arith.constant 0 : i32
    %2 = arith.cmpi ne, %1, %c0_i32_0 : i32
    scf.if %2 {
      %cst_13 = arith.constant 0.000000e+00 : f32
      %17 = vector.broadcast %cst_13 : f32 to vector<8x128xf32>
      %c0_14 = arith.constant 0 : index
      %c0_15 = arith.constant 0 : index
      %18 = vector.load %arg4[%c0_14, %c0_15] : memref<8x128xf32, #tpu.memory_space<vmem>>, vector<8x128xf32>
      tpu.vector_store %arg4[%c0_14, %c0_15], %17 {strides = array<i32>} : memref<8x128xf32, #tpu.memory_space<vmem>>, vector<8x128xf32>,
      %cst_16 = arith.constant 0.000000e+00 : f32
      %19 = vector.broadcast %cst_16 : f32 to vector<8x128xf32>
      %c0_17 = arith.constant 0 : index
      %c0_18 = arith.constant 0 : index
      %20 = vector.load %arg5[%c0_17, %c0_18] : memref<8x128xf32, #tpu.memory_space<vmem>>, vector<8x128xf32>
      tpu.vector_store %arg5[%c0_17, %c0_18], %19 {strides = array<i32>} : memref<8x128xf32, #tpu.memory_space<vmem>>, vector<8x128xf32>,
    } else {
    }
    %c0 = arith.constant 0 : index
    %c0_1 = arith.constant 0 : index
    %3 = vector.load %arg1[%c0, %c0_1] : memref<64x128xf32, #tpu.memory_space<vmem>>, vector<64x128xf32>
    %4 = vector.shape_cast %3 : vector<64x128xf32> to vector<8x8x128xf32>
    %c0_2 = arith.constant 0 : index
    %c0_3 = arith.constant 0 : index
    %5 = vector.load %arg4[%c0_2, %c0_3] : memref<8x128xf32, #tpu.memory_space<vmem>>, vector<8x128xf32>
    %cst = arith.constant dense<0.000000e+00> : vector<8x128xf32>
    %6 = vector.multi_reduction <add>, %4, %cst [0] : vector<8x8x128xf32> to vector<8x128xf32>
    %7 = arith.addf %5, %6 : vector<8x128xf32>
    %c0_4 = arith.constant 0 : index
    %c0_5 = arith.constant 0 : index
    %8 = vector.load %arg4[%c0_4, %c0_5] : memref<8x128xf32, #tpu.memory_space<vmem>>, vector<8x128xf32>
    tpu.vector_store %arg4[%c0_4, %c0_5], %7 {strides = array<i32>} : memref<8x128xf32, #tpu.memory_space<vmem>>, vector<8x128xf32>,
    %c0_6 = arith.constant 0 : index
    %c0_7 = arith.constant 0 : index
    %9 = vector.load %arg5[%c0_6, %c0_7] : memref<8x128xf32, #tpu.memory_space<vmem>>, vector<8x128xf32>
    %10 = arith.mulf %4, %4 : vector<8x8x128xf32>
    %cst_8 = arith.constant dense<0.000000e+00> : vector<8x128xf32>
    %11 = vector.multi_reduction <add>, %10, %cst_8 [0] : vector<8x8x128xf32> to vector<8x128xf32>
    %12 = arith.addf %9, %11 : vector<8x128xf32>
    %c0_9 = arith.constant 0 : index
    %c0_10 = arith.constant 0 : index
    %13 = vector.load %arg5[%c0_9, %c0_10] : memref<8x128xf32, #tpu.memory_space<vmem>>, vector<8x128xf32>
    tpu.vector_store %arg5[%c0_9, %c0_10], %12 {strides = array<i32>} : memref<8x128xf32, #tpu.memory_space<vmem>>, vector<8x128xf32>,
    %c0_i32_11 = arith.constant 0 : i32
    %14 = arith.cmpi eq, %arg0, %c0_i32_11 : i32
    %15 = arith.extui %14 : i1 to i32
    %c0_i32_12 = arith.constant 0 : i32
    %16 = arith.cmpi ne, %15, %c0_i32_12 : i32
    scf.if %16 {
      %c0_13 = arith.constant 0 : index
      %c0_14 = arith.constant 0 : index
      %17 = vector.load %arg4[%c0_13, %c0_14] : memref<8x128xf32, #tpu.memory_space<vmem>>, vector<8x128xf32>
      %cst_15 = arith.constant dense<0.000000e+00> : vector<128xf32>
      %18 = vector.multi_reduction <add>, %17, %cst_15 [0] : vector<8x128xf32> to vector<128xf32>
      %19 = vector.shape_cast %18 : vector<128xf32> to vector<1x128xf32>
      %cst_16 = arith.constant 6.250000e-02 : f32
      %20 = vector.broadcast %cst_16 : f32 to vector<1x128xf32>
      %21 = arith.mulf %19, %20 : vector<1x128xf32>
      %c0_17 = arith.constant 0 : index
      %c0_18 = arith.constant 0 : index
      %22 = vector.load %arg5[%c0_17, %c0_18] : memref<8x128xf32, #tpu.memory_space<vmem>>, vector<8x128xf32>
      %cst_19 = arith.constant dense<0.000000e+00> : vector<128xf32>
      %23 = vector.multi_reduction <add>, %22, %cst_19 [0] : vector<8x128xf32> to vector<128xf32>
      %24 = vector.shape_cast %23 : vector<128xf32> to vector<1x128xf32>
      %cst_20 = arith.constant 6.250000e-02 : f32
      %25 = vector.broadcast %cst_20 : f32 to vector<1x128xf32>
      %26 = arith.mulf %24, %25 : vector<1x128xf32>
      %c0_21 = arith.constant 0 : index
      %c0_22 = arith.constant 0 : index
      %27 = vector.load %arg2[%c0_21, %c0_22] : memref<1x128xf32, #tpu.memory_space<vmem>>, vector<1x128xf32>
      tpu.vector_store %arg2[%c0_21, %c0_22], %21 {strides = array<i32>} : memref<1x128xf32, #tpu.memory_space<vmem>>, vector<1x128xf32>,
      %28 = arith.mulf %21, %21 : vector<1x128xf32>
      %29 = arith.subf %26, %28 : vector<1x128xf32>
      %cst_23 = arith.constant 0.000000e+00 : f32
      %30 = vector.broadcast %cst_23 : f32 to vector<1x128xf32>
      %31 = arith.maximumf %29, %30 : vector<1x128xf32>
      %c0_24 = arith.constant 0 : index
      %c0_25 = arith.constant 0 : index
      %32 = vector.load %arg3[%c0_24, %c0_25] : memref<1x128xf32, #tpu.memory_space<vmem>>, vector<1x128xf32>
      tpu.vector_store %arg3[%c0_24, %c0_25], %31 {strides = array<i32>} : memref<1x128xf32, #tpu.memory_space<vmem>>, vector<1x128xf32>,
    } else {
    }
    return
  }
  func.func @transform_0(%arg0: i32) -> (i32, i32) {
    %c0_i32 = arith.constant 0 : i32
    %c0_i32_0 = arith.constant 0 : i32
    return %arg0, %c0_i32 : i32, i32
  }
  func.func @transform_1(%arg0: i32) -> (i32, i32) {
    %c0_i32 = arith.constant 0 : i32
    %c0_i32_0 = arith.constant 0 : i32
    %c0_i32_1 = arith.constant 0 : i32
    return %c0_i32, %c0_i32_0 : i32, i32
  }
  func.func @transform_2(%arg0: i32) -> (i32, i32) {
    %c0_i32 = arith.constant 0 : i32
    %c0_i32_0 = arith.constant 0 : i32
    %c0_i32_1 = arith.constant 0 : i32
    return %c0_i32, %c0_i32_0 : i32, i32
  }
}

</mosaic_0001>

<bundles_post_ra>
// kernel: tpu_custom_call.1
= control target key start
LH: loop header
LB: loop body
LE: loop exit
PB: predicated region body
PF: predicated region fallthrough
CT: control target
= control target key end

     0   :  { %8 = vsyncpa [#allocation5], 0  ;;  %s221_s0 = inlined_call_operand.hbm [shape: f32[64,128], index: 0, kind: input, shape index: {}]   ;;  %s222_s1 = inlined_call_operand.hbm [shape: f32[1,128], index: 1, kind: output, shape index: {0}]   ;;  %s223_s2 = inlined_call_operand.hbm [shape: f32[1,128], index: 2, kind: output, shape index: {1}]  }
   0x1   :  { %9 = vsyncpa [#allocation6], 0 }
   0x2   :  { %10 = vsyncpa [#allocation9], 0  ;;  %s192_s9 = smov [#allocation4]  }
   0x3   :  { %s16_s10 = sshll.u32 %s192_s9, 4  ;;  %s17_s10 = int_to_ptr.vmem [resolvable:$true] %s16_s10 }
   0x4   :  { %s134_s11 = scalar_lea.vmem %s17_s10, 1024  ;;  %p139_p1 = scmp.lt.s32.totalorder %s17_s10, %s17_s10 }
   0x5   :  { %p135_p0 = scmp.ne.s32.totalorder %s17_s10, %s134_s11  ;;  %p140_p2 = scmp.lt.s32.totalorder %s134_s11, %s134_s11 }
   0x7   :  { %p141_p3 = por %p140_p2, %p139_p1 }
   0x9   :  { %p142_p4 = pnand %p141_p3, %p135_p0 }
   0xb   :  { %145 = shalt.err (!%p142_p4)
}
   0xc   :  { %s193_s12 = smov 128   ;;  %s194_s13 = smov 8  }
   0xd   :  { %22 = dma.hbm_to_vmem [thread:$0]  %s221_s0, 1024, %s17_s10, [#allocation5], %s193_s12, %s193_s12, %s194_s13  }
   0xe   :  { %186 = dma.done.wait [#allocation5], 1024  }
   0xf   :  { %187 = vsyncadd [#allocation5], 4294966272  ;;  %v32_v0 = vld [vmem:[#allocation4] sm:$0xff]  ;;  %v33_v1 = vld [vmem:[#allocation4 + $0x8] sm:$0xff]  ;;  %s195_s0 = smov [#allocation7]   ;;  %s196_s17 = smov [#allocation8]  }
  0x10   :  { %v34_v2 = vld [vmem:[#allocation4 + $0x10] sm:$0xff]  ;;  %v35_v3 = vld [vmem:[#allocation4 + $0x18] sm:$0xff]  ;;  %v41_v4 = vadd.f32 %v33_v1, %v32_v0  ;;  %v51_v5 = vmul.f32 %v32_v0, %v32_v0  ;;  %v52_v6 = vmul.f32 %v33_v1, %v33_v1  ;;  %v36_v8 = vld [vmem:[#allocation4 + $0x20] sm:$0xff]  ;;  %s98_s16 = sshll.u32 %s195_s0, 4  ;;  %s108_s18 = sshll.u32 %s196_s17, 4  ;;  %s99_s16 = int_to_ptr.vmem [resolvable:$true] %s98_s16  ;;  %s109_s18 = int_to_ptr.vmem [resolvable:$true] %s108_s18 }
  0x11   :  { %v53_v7 = vmul.f32 %v34_v2, %v34_v2  ;;  %v54_v10 = vmul.f32 %v35_v3, %v35_v3  ;;  %v37_v12 = vld [vmem:[#allocation4 + $0x28] sm:$0xff]  ;;  %v55_v14 = vmul.f32 %v36_v8, %v36_v8  ;;  %v38_v16 = vld [vmem:[#allocation4 + $0x30] sm:$0xff]  ;;  %v39_v20 = vld [vmem:[#allocation4 + $0x38] sm:$0xff]  ;;  %s146_s19 = scalar_lea.vmem %s99_s16, 16  ;;  %s150_s20 = scalar_lea.vmem %s99_s16, 32 }
  0x12   :  { %v42_v9 = vadd.f32 %v41_v4, %v34_v2  ;;  %v59_v11 = vadd.f32 %v52_v6, %v51_v5  ;;  %v56_v18 = vmul.f32 %v37_v12, %v37_v12  ;;  %v57_v22 = vmul.f32 %v38_v16, %v38_v16  ;;  %p147_p5 = scmp.ne.s32.totalorder %s99_s16, %s146_s19  ;;  %p151_p6 = scmp.lt.s32.totalorder %s99_s16, %s99_s16 }
  0x13   :  { %v58_v25 = vmul.f32 %v39_v20, %v39_v20  ;;  %p152_p7 = scmp.lt.s32.totalorder %s150_s20, %s146_s19 }
  0x14   :  { %v43_v13 = vadd.f32 %v42_v9, %v35_v3  ;;  %v60_v15 = vadd.f32 %v59_v11, %v53_v7 }
  0x15   :  { %p153_p8 = por %p152_p7, %p151_p6 }
  0x16   :  { %v44_v17 = vadd.f32 %v43_v13, %v36_v8  ;;  %v61_v19 = vadd.f32 %v60_v15, %v54_v10 }
  0x17   :  { %p154_p9 = pnand %p153_p8, %p147_p5 }
  0x18   :  { %v45_v21 = vadd.f32 %v44_v17, %v37_v12  ;;  %v62_v23 = vadd.f32 %v61_v19, %v55_v14 }
  0x1a   :  { %v46_v24 = vadd.f32 %v45_v21, %v38_v16  ;;  %v63_v26 = vadd.f32 %v62_v23, %v56_v18 }
  0x1c   :  { %v47_v27 = vadd.f32 %v46_v24, %v39_v20  ;;  %v64_v28 = vadd.f32 %v63_v26, %v57_v22 }
  0x1e   :  { %v72_v29 = vrot.slane %v47_v27, 4  ;;  %v65_v30 = vadd.f32 %v64_v28, %v58_v25 }
  0x20   :  { %v73_v31 = vadd.f32 %v72_v29, %v47_v27  ;;  %v80_v32 = vrot.slane %v65_v30, 4 }
  0x22   :  { %v74_v33 = vrot.slane %v73_v31, 2  ;;  %v81_v34 = vadd.f32 %v80_v32, %v65_v30 }
  0x24   :  { %v75_v35 = vadd.f32 %v74_v33, %v73_v31  ;;  %v82_v36 = vrot.slane %v81_v34, 2 }
  0x26   :  { %v76_v37 = vrot.slane %v75_v35, 1  ;;  %v83_v38 = vadd.f32 %v82_v36, %v81_v34 }
  0x28   :  { %v77_v39 = vadd.f32 %v76_v37, %v75_v35  ;;  %v84_v40 = vrot.slane %v83_v38, 1 }
  0x2a   :  { %v78_v41 = vmul.f32 0.0625, %v77_v39  ;;  %v85_v42 = vadd.f32 %v84_v40, %v83_v38 }
  0x2c   :  { %87 = vst [vmem:[#allocation7] sm:$0x1] %v78_v41  ;;  %v88_v43 = vmul.f32 %v78_v41, %v78_v41  ;;  %v86_v44 = vmul.f32 0.0625, %v85_v42 }
  0x2d   :  { %157 = shalt.err (!%p154_p9)
}
  0x2e   :  { %101 = dma.vmem_to_hbm [thread:$0]  %s99_s16, 16, %s222_s1, [#allocation6]   ;;  %v89_v45 = vsub.f32 %v86_v44, %v88_v43 }
  0x2f   :  { %s166_s23 = scalar_lea.vmem %s109_s18, 16  ;;  %s170_s24 = scalar_lea.vmem %s109_s18, 32 }
  0x30   :  { %v90_v46 = vmax.f32 %v89_v45, 0.0  ;;  %p167_p10 = scmp.ne.s32.totalorder %s109_s18, %s166_s23  ;;  %p171_p11 = scmp.lt.s32.totalorder %s109_s18, %s109_s18 }
  0x31   :  { %p172_p12 = scmp.lt.s32.totalorder %s170_s24, %s166_s23 }
  0x32   :  { %91 = vst [vmem:[#allocation8] sm:$0x1] %v90_v46 }
  0x33   :  { %p173_p13 = por %p172_p12, %p171_p11 }
  0x35   :  { %p174_p0 = pnand %p173_p13, %p167_p10 }
  0x37   :  { %177 = shalt.err (!%p174_p0)
}
  0x38   :  { %111 = dma.vmem_to_hbm [thread:$0]  %s109_s18, 16, %s223_s2, [#allocation9]  }
  0x39   :  { %188 = dma.done.wait [#allocation6], 16  }
  0x3a   :  { %189 = vsyncadd [#allocation6], 4294967280 }
  0x3b   :  { %190 = dma.done.wait [#allocation9], 16  }
  0x3c   :  { %191 = vsyncadd [#allocation9], 4294967280 }
  0x3d   :  { %118 = vsyncpa [#allocation5], 1 }
  0x3e   :  { %119 = vsyncpa [#allocation6], 1 }
  0x3f   :  { %120 = vsyncpa [#allocation9], 1 }

</bundles_post_ra>
